<compile_context>
chip_gen: v7x
topology: tpu7x:2x2x1
jax: 0.10.0
libtpu: 0.0.40
codegen_flags: <defaults>
</compile_context>

<pallas_src>
import functools

import jax
import jax.numpy as jnp
from jax.experimental import pallas as pl
from jax.experimental.pallas import tpu as pltpu

HIDDEN = 512
EPS = 1e-8
ALPHA = 0.0


def _round_up(n, m):
    return ((n + m - 1) // m) * m


def _pick_row_tile():
    """Per-chip default row tile (rows per grid step)."""
    try:
        kind = jax.devices()[0].device_kind.lower()
    except Exception:
        return 1024
    if "v7" in kind:
        # ~3.2 TB/s HBM: 4 MiB f32 blocks needed to amortize per-step overhead.
        return 2048
    # v5e / v6e: 2 MiB blocks already ~85-86% of HBM roofline, and safely under
    # v5e's 16 MiB scoped-VMEM default even with the resident weight.
    return 1024


def _rmsnorm_only_kernel(x_ref, o_ref, *, eps):
    # Pure RMS normalization (alpha == 0 path): no weight, no matmul.
    x = x_ref[...].astype(jnp.float32)
    ms = jnp.mean(x * x, axis=-1, keepdims=True)
    o_ref[...] = (x * jax.lax.rsqrt(ms + eps)).astype(o_ref.dtype)


def _rmsnorm_mix_kernel(x_ref, wt_ref, o_ref, *, eps, one_minus_alpha):
    # Mixed path (alpha != 0): wt_ref already holds alpha * W^T, so
    #   scaled * (1-alpha) + x @ (alpha*W^T)  ==  (1-alpha)*scaled + alpha*Linear(x).
    x = x_ref[...]
    xf = x.astype(jnp.float32)
    ms = jnp.mean(xf * xf, axis=-1, keepdims=True)
    scaled = xf * (one_minus_alpha * jax.lax.rsqrt(ms + eps))
    # MXU operands in wt's dtype (bf16 fast path when requested); f32 accumulate.
    lin = jnp.dot(x.astype(wt_ref.dtype), wt_ref[...],
                  preferred_element_type=jnp.float32)
    o_ref[...] = (scaled + lin).astype(o_ref.dtype)


def rmsnorm(x, weight=None, *, eps=EPS, alpha=ALPHA, tm=None, matmul_dtype=None):
    """RMSNorm forward.

    x:            [..., HIDDEN] array (feature dim last, like PyTorch).
    weight:       PyTorch-style Linear weight (out, in) = (HIDDEN, HIDDEN); only
                  used when alpha != 0.
    alpha:        static Python float (trace-time specialization).
    matmul_dtype: optional dtype for the MXU operands on the mixed path (e.g.
                  jnp.bfloat16 on v7x).  Default: keep x's native dtype.
    """
    orig_shape = x.shape
    H = orig_shape[-1]
    assert H == HIDDEN, f"expected feature dim {HIDDEN}, got {H}"
    # Static specialization on alpha; a traced alpha raises here by design.
    alpha = float(alpha)

    x2d = x.reshape(-1, H)
    rows = x2d.shape[0]
    if tm is None:
        tm = _pick_row_tile()

    # Sublane alignment for the row (second-minor) axis.
    sub = 16 if x2d.dtype == jnp.bfloat16 else 8
    rows_rounded = _round_up(rows, sub)
    tm_eff = max(_round_up(min(tm, rows_rounded), sub), sub)
    # Prefer >= 2 grid steps so the "parallel" axis can shard across both of
    # v7x's TensorCores; one extra grid step is noise on single-TC chips.
    if pl.cdiv(rows, tm_eff) < 2 and rows_rounded >= 2 * sub:
        tm_eff = _round_up(pl.cdiv(rows_rounded, 2), sub)

    grid = (pl.cdiv(rows, tm_eff),)
    x_spec = pl.BlockSpec((tm_eff, H), lambda i: (i, 0))
    out_spec = pl.BlockSpec((tm_eff, H), lambda i: (i, 0))
    out_shape = jax.ShapeDtypeStruct((rows, H), x.dtype)
    xbytes = rows * H * x.dtype.itemsize

    if alpha == 0.0:
        # ---- Fast path: no linear branch, no weight DMA, no matmul. ----
        kernel = functools.partial(_rmsnorm_only_kernel, eps=eps)
        cost = pl.CostEstimate(
            flops=3 * rows * H,
            transcendentals=rows,
            bytes_accessed=2 * xbytes,
        )
        out = pl.pallas_call(
            kernel,
            out_shape=out_shape,
            grid_spec=pltpu.PrefetchScalarGridSpec(
                num_scalar_prefetch=0,
                grid=grid,
                in_specs=[x_spec],
                out_specs=out_spec,
            ),
            compiler_params=pltpu.CompilerParams(
                dimension_semantics=("parallel",)),
            cost_estimate=cost,
        )(x2d)
    else:
        # ---- Mixed path: RMS-normalized branch + alpha * Linear(x). ----
        assert weight is not None, "weight required when alpha != 0"
        # Fold alpha into W^T once (resident across all grid steps).
        wt = weight.T * alpha
        wt = wt.astype(matmul_dtype if matmul_dtype is not None else weight.dtype)
        kernel = functools.partial(
            _rmsnorm_mix_kernel, eps=eps, one_minus_alpha=float(1.0 - alpha))
        wbytes = H * H * wt.dtype.itemsize
        cost = pl.CostEstimate(
            flops=2 * rows * H * H + 3 * rows * H,
            transcendentals=rows,
            bytes_accessed=2 * xbytes + wbytes,
        )
        out = pl.pallas_call(
            kernel,
            out_shape=out_shape,
            grid_spec=pltpu.PrefetchScalarGridSpec(
                num_scalar_prefetch=0,
                grid=grid,
                in_specs=[
                    x_spec,
                    pl.BlockSpec((H, H), lambda i: (0, 0)),  # resident alpha*W^T
                ],
                out_specs=out_spec,
            ),
            compiler_params=pltpu.CompilerParams(
                dimension_semantics=("parallel",)),
            cost_estimate=cost,
        )(x2d, wt)

    return out.reshape(orig_shape)


def rmsnorm_ref(x, weight, *, eps=EPS, alpha=ALPHA):
    x32 = x.astype(jnp.float32)
    scaled = x32 * jax.lax.rsqrt(jnp.mean(x32 * x32, axis=-1, keepdims=True) + eps)
    lin = x32 @ weight.T.astype(jnp.float32)
    return ((1.0 - alpha) * scaled + alpha * lin).astype(x.dtype)


if __name__ == "__main__":
    key = jax.random.PRNGKey(0)
    kx, kw, kx2 = jax.random.split(key, 3)

    # Small shapes consistent with the forward: batch=2, seq=8, hidden=512.
    x = jax.random.normal(kx, (2, 8, HIDDEN), dtype=jnp.float32)
    # Deterministic Linear(512, 512, bias=False) weight (PyTorch-style uniform init).
    bound = 1.0 / (HIDDEN ** 0.5)
    w = jax.random.uniform(kw, (HIDDEN, HIDDEN), dtype=jnp.float32,
                           minval=-bound, maxval=bound)

    # Default module config: alpha = 0.0 (fast path, no matmul / weight DMA).
    out = jax.block_until_ready(rmsnorm(x, w))
    ref = rmsnorm_ref(x, w)
    assert out.shape == x.shape
    assert jnp.allclose(out, ref, atol=1e-5, rtol=1e-5), "mismatch (alpha=0)"

    # Row count not divisible by the tile -> exercises the masked edge block.
    x_odd = jax.random.normal(kx2, (3, 5, HIDDEN), dtype=jnp.float32)
    out_odd = jax.block_until_ready(rmsnorm(x_odd))
    ref_odd = rmsnorm_ref(x_odd, w)
    assert jnp.allclose(out_odd, ref_odd, atol=1e-5, rtol=1e-5), "mismatch (edge block)"

    # Mixed (alpha != 0) MXU path for coverage (f32 MXU feed -> matches reference).
    a = 0.25
    out_mix = jax.block_until_ready(rmsnorm(x, w, alpha=a))
    ref_mix = rmsnorm_ref(x, w, alpha=a)
    assert jnp.allclose(out_mix, ref_mix, atol=1e-4, rtol=1e-4), "mismatch (alpha!=0)"

    print("KERNEL_OK")
</pallas_src>

<mosaic_0001>
module attributes {stable_mosaic.version = 11 : i64} {
  func.func @_rmsnorm_only_kernel(%arg0: i32, %arg1: memref<8x512xf32, #tpu.memory_space<vmem>>, %arg2: memref<8x512xf32, #tpu.memory_space<vmem>>) attributes {dimension_semantics = [#tpu.dimension_semantics<parallel>], iteration_bounds = array<i64: 2>, scalar_prefetch = 0 : i64, scratch_operands = 0 : i64, tpu.core_type = #tpu.core_type<tc>, window_params = [{transform_indices = @transform_0, window_bounds = array<i64: 8, 512>}, {transform_indices = @transform_1, window_bounds = array<i64: 8, 512>}]} {
    %c0 = arith.constant 0 : index
    %c0_0 = arith.constant 0 : index
    %0 = vector.load %arg1[%c0, %c0_0] : memref<8x512xf32, #tpu.memory_space<vmem>>, vector<8x512xf32>
    %1 = arith.mulf %0, %0 : vector<8x512xf32>
    %cst = arith.constant dense<0.000000e+00> : vector<8xf32>
    %2 = vector.multi_reduction <add>, %1, %cst [1] : vector<8x512xf32> to vector<8xf32>
    %3 = vector.shape_cast %2 : vector<8xf32> to vector<8x1xf32>
    %cst_1 = arith.constant 5.120000e+02 : f32
    %4 = vector.broadcast %cst_1 : f32 to vector<8x1xf32>
    %5 = arith.divf %3, %4 : vector<8x1xf32>
    %cst_2 = arith.constant 9.99999993E-9 : f32
    %6 = vector.broadcast %cst_2 : f32 to vector<8x1xf32>
    %7 = arith.addf %5, %6 : vector<8x1xf32>
    %8 = math.rsqrt %7 : vector<8x1xf32>
    %9 = vector.broadcast %8 : vector<8x1xf32> to vector<8x512xf32>
    %10 = arith.mulf %0, %9 : vector<8x512xf32>
    %c0_3 = arith.constant 0 : index
    %c0_4 = arith.constant 0 : index
    %11 = vector.load %arg2[%c0_3, %c0_4] : memref<8x512xf32, #tpu.memory_space<vmem>>, vector<8x512xf32>
    tpu.vector_store %arg2[%c0_3, %c0_4], %10 {strides = array<i32>} : memref<8x512xf32, #tpu.memory_space<vmem>>, vector<8x512xf32>,
    return
  }
  func.func @transform_0(%arg0: i32) -> (i32, i32) {
    %c0_i32 = arith.constant 0 : i32
    %c0_i32_0 = arith.constant 0 : i32
    return %arg0, %c0_i32 : i32, i32
  }
  func.func @transform_1(%arg0: i32) -> (i32, i32) {
    %c0_i32 = arith.constant 0 : i32
    %c0_i32_0 = arith.constant 0 : i32
    return %arg0, %c0_i32 : i32, i32
  }
}

</mosaic_0001>

<bundles_post_ra>
// kernel: tpu_custom_call.1
= control target key start
LH: loop header
LB: loop body
LE: loop exit
PB: predicated region body
PF: predicated region fallthrough
CT: control target
= control target key end

     0   :  { %6 = vsyncpa [#allocation3], 0  ;;  %s578_s0 = inlined_call_operand.hbm [shape: f32[16,512], index: 0, kind: input, shape index: {}]   ;;  %s579_s1 = inlined_call_operand.hbm [shape: f32[16,512], index: 1, kind: output, shape index: {}]  }
   0x1   :  { %8 = vsyncpa [#allocation3 + $0x1], 0 }
   0x2   :  { %9 = vsyncpa [#allocation4], 0 }
   0x3   :  { %11 = vsyncpa [#allocation4 + $0x1], 0  ;;  %s417_s6 = smov 0   ;;  %s419_s7 = smov 0  }
   0x4   :  { %s421_s8 = smov 0   ;;  %s423_s9 = smov 0  }
   0x5 LB: > { %s438_s10 = sadd.s32 4294967295, %s403_s9   ;;  %s243_s11 = sadd.s32 4294967294, %s403_s9   ;;  %s403_s9 = sphi %s423_s9, %s594_s9   ;;  %s399_s8 = sphi %s421_s8, %s593_s8   ;;  %s395_s7 = sphi %s419_s7, %s592_s7   ;;  %s391_s6 = sphi %s417_s6, %s591_s6  }
   0x6   : > { %s442_s12 = sadd.s32 1, %s403_s9   ;;  %s24_s13 = sadd.s32 1, %s399_s8 }
   0x7   : > { %s21_s14 = ssub.s32 %s403_s9, %s442_s12  ;;  %p31_p0 = scmp.ne.s32.totalorder %s399_s8, %s395_s7 }
   0x8   : > { %p22_p1 = scmp.eq.s32.totalorder %s21_s14, 0  ;;  %p32_p2 = scmp.eq.s32.totalorder %s403_s9, 0 }
   0x9   : > { %p37_p3 = scmp.ne.s32.totalorder %s395_s7, %s391_s6  ;;  %p38_p4 = scmp.eq.s32.totalorder %s438_s10, 0 }
   0xa   : > { %s454_s15 = scalar_select %p22_p1, %s399_s8, %s24_s13  }
   0xb   : > { %p456_p5 = por %p32_p2, %p31_p0  ;;  %p460_p6 = por %p38_p4, %p37_p3 }
   0xc   : > { %p61_p7 = scmp.eq.s32.totalorder %s438_s10, 1  ;;  %p67_p8 = scmp.eq.s32.totalorder %s243_s11, 1 }
   0xd   : > { %p271_p10 = scmp.lt.s32.totalorder %s403_s9, 2  ;;  %s87_s20 = sand.u32 1, %s399_s8  }
   0xe   : > { %p467_p11 = por %p61_p7, %p31_p0  ;;  %p471_p12 = por %p67_p8, %p37_p3 }
   0xf   : > { %s257_s21 = sshll.u32 %s403_s9, 9  ;;  %s246_s22 = sshll.u32 %s87_s20, 5 }
  0x10   : > { %s583_s18 = scalar_select %p467_p11, 1, 0 }
  0x11   : > { %s584_s19 = scalar_select %p471_p12, 1, 0 }
  0x12   : > { %s480_s25 = scalar_lea.hbm %s578_s0, %s257_s21  ;;  %s91_s26 = scalar_lea.vmem [#allocation2], %s246_s22 }
  0x13   : > { %s99_s27 = sshll.u32 %s91_s26, 4  ;;  %p484_p13 = pnand %p271_p10, %p456_p5  ;;  %s488_s27 = int_to_ptr.vmem [resolvable:$true] %s99_s27 }
  0x14   : > { %s88_s29 = scalar_lea.sflag [#allocation3], %s87_s20  ;;  %s307_s30 = scalar_lea.hbm %s480_s25, 512 }
  0x15   : > { %p308_p2 = scmp.ne.s32.totalorder %s480_s25, %s307_s30  ;;  %p309_p3 = pneg %p484_p13 }
  0x16   : > { %s312_s4 = scalar_lea.hbm %s578_s0, 1024  ;;  %p313_p5 = scmp.lt.u32.totalorder %s480_s25, %s578_s0 }
  0x17   : > { %p310_p4 = pnand %p309_p3, %p308_p2  ;;  %p314_p8 = scmp.lt.u32.totalorder %s312_s4, %s307_s30 }
  0x18   : > { %p316_p9 = scmp.lt.u32.totalorder %s307_s30, %s480_s25 }
  0x19   : > { %p311_p7 = pneg %p310_p4  ;;  %p315_p10 = por %p314_p8, %p313_p5 }
  0x1b   : > { %p317_p0 = por %p316_p9, %p315_p10 }
  0x1d   : > { %p318_p1 = pnand %p317_p0, %p311_p7 }
  0x1f   : > { %321 = shalt.err (!%p318_p1)
}
  0x20   : > { %s322_s13 = scalar_lea.vmem %s488_s27, 512  ;;  %s405_s14 = smov [#allocation2]  }
  0x21   : > { %p323_p2 = scmp.ne.s32.totalorder %s488_s27, %s322_s13  ;;  %s327_s16 = sshll.u32 %s405_s14, 4  ;;  %s328_s16 = int_to_ptr.vmem [resolvable:$false] %s327_s16 }
  0x22   : > { %s329_s20 = scalar_lea.vmem %s328_s16, 1024  ;;  %p330_p11 = scmp.lt.s32.totalorder %s488_s27, %s328_s16 }
  0x23   : > { %p325_p4 = pnand %p323_p2, %p309_p3  ;;  %p331_p5 = scmp.lt.s32.totalorder %s329_s20, %s322_s13 }
  0x25   : > { %p326_p12 = pneg %p325_p4  ;;  %p332_p8 = por %p331_p5, %p330_p11 }
  0x27   : > { %p333_p9 = pnand %p332_p8, %p326_p12 }
  0x29   : > { %336 = shalt.err (!%p333_p9)
}
  0x2a   : > { %266 = dma.hbm_to_vmem [thread:$0]  (!%p484_p13), %s480_s25, 512, %s488_s27, %s88_s29  }
  0x2b   : > { %p586_p0 = scmp.lt.s32.totalorder %s403_s9, 3  ;;  %p587_p1 = scmp.ge.s32.totalorder %s403_s9, 1 }
  0x2d   : > { %p105_p3 = pnand %p587_p1, %p586_p0 }
  0x2e   : > { %s522_s21 = sand.u32 (!%p105_p3), 1, %s395_s7  }
  0x2f   : > { %108 = sbr.rel (%p105_p3) target bundleno = 238 (0xee), region = 24  ;;  %s250_s22 = sshll.u32 (!%p105_p3), %s522_s21, 5 }
  0x30   : > { %s111_s23 = scalar_lea.sflag (!%p105_p3), [#allocation3], %s522_s21  ;;  %s114_s24 = scalar_lea.vmem (!%p105_p3), [#allocation2], %s250_s22 }
  0x36   : > { %382 = dma.done.wait (%p460_p6), %s111_s23, 512  }
  0x37   : > { %384 = vsyncadd (%p460_p6), %s111_s23, 4294966784  ;;  %v133_v0 = vld [vmem:[%s114_s24] sm:$0xff]  ;;  %v134_v1 = vld [vmem:[%s114_s24 + $0x8] sm:$0xff]  ;;  %s258_s17 = sshll.u32 %s438_s10, 9  ;;  %s132_s25 = scalar_lea.vmem [#allocation5], %s250_s22 }
  0x38   : > { %v135_v2 = vld [vmem:[%s114_s24 + $0x10] sm:$0xff]  ;;  %v136_v3 = vld [vmem:[%s114_s24 + $0x18] sm:$0xff]  ;;  %v137_v4 = vmul.f32 %v133_v0, %v133_v0  ;;  %v138_v5 = vmul.f32 %v134_v1, %v134_v1  ;;  %s173_s26 = sshll.u32 %s132_s25, 4  ;;  %s534_s29 = scalar_lea.hbm %s579_s1, %s258_s17  ;;  %s536_s26 = int_to_ptr.vmem [resolvable:$true] %s173_s26 }
  0x39   : > { %v139_v6 = vmul.f32 %v135_v2, %v135_v2  ;;  %v140_v7 = vmul.f32 %v136_v3, %v136_v3  ;;  %s159_s10 = scalar_lea.sflag [#allocation4], %s522_s21  ;;  %s337_s30 = scalar_lea.vmem %s536_s26, 512 }
  0x3a   : > { %v141_v8 = vadd.f32 %v138_v5, %v137_v4  ;;  %p338_p6 = scmp.ne.s32.totalorder %s536_s26, %s337_s30  ;;  %p588_p11 = scmp.ne.s32.totalorder %s583_s18, 0 }
  0x3b   : > { %s406_s2 = smov [#allocation5]  }
  0x3c   : > { %v142_v9 = vadd.f32 %v141_v8, %v139_v6  ;;  %p339_p12 = pnand %p338_p6, %p588_p11  ;;  %s341_s3 = sshll.u32 %s406_s2, 4  ;;  %s342_s3 = int_to_ptr.vmem [resolvable:$false] %s341_s3 }
  0x3d   : > { %s343_s4 = scalar_lea.vmem %s342_s3, 1024  ;;  %p344_p7 = scmp.lt.s32.totalorder %s536_s26, %s342_s3 }
  0x3e   : > { %v143_v10 = vadd.f32 %v142_v9, %v140_v7  ;;  %p340_p13 = pneg %p339_p12  ;;  %p345_p10 = scmp.lt.s32.totalorder %s343_s4, %s337_s30 }
  0x40   : > { %144 = vadd.xlane.f32.xlu0 %v143_v10  ;;  %p346_p2 = por %p345_p10, %p344_p7 }
  0x42   : > { %p347_p4 = pnand %p346_p2, %p340_p13 }
  0xcd   : > { %v145_v11 = vpop.xlane.xlu0 %144 }
  0xce   : > { %v147_v12 = vmul.f32 0.001953125, %v145_v11 }
  0xd0   : > { %v148_v13 = vadd.f32 1e-08, %v147_v12 }
  0xd2   : > { %305 = vrsqrt.f32 %v148_v13 }
  0xdc   : > { %v306_v14 = vpop.eup %305 }
  0xdd   : > { %v150_v15 = vmul.f32 %v306_v14, %v133_v0  ;;  %v151_v16 = vmul.f32 %v306_v14, %v134_v1  ;;  %v152_v17 = vmul.f32 %v306_v14, %v135_v2  ;;  %v153_v18 = vmul.f32 %v306_v14, %v136_v3 }
  0xdf   : > { %154 = vst [vmem:[%s132_s25] sm:$0xff] %v150_v15  ;;  %155 = vst [vmem:[%s132_s25 + $0x8] sm:$0xff] %v151_v16 }
  0xe0   : > { %156 = vst [vmem:[%s132_s25 + $0x10] sm:$0xff] %v152_v17  ;;  %157 = vst [vmem:[%s132_s25 + $0x18] sm:$0xff] %v153_v18 }
  0xe1   : > { %350 = shalt.err (!%p347_p4)
}
  0xe2   : > { %s351_s5 = scalar_lea.hbm %s534_s29, 512  ;;  %s355_s14 = scalar_lea.hbm %s579_s1, 1024 }
  0xe3   : > { %p352_p5 = scmp.ne.s32.totalorder %s534_s29, %s351_s5  ;;  %p356_p0 = scmp.lt.u32.totalorder %s534_s29, %s579_s1 }
  0xe4   : > { %p357_p1 = scmp.lt.u32.totalorder %s355_s14, %s351_s5  ;;  %p359_p6 = scmp.lt.u32.totalorder %s351_s5, %s534_s29 }
  0xe5   : > { %p353_p8 = pnand %p352_p5, %p588_p11 }
  0xe6   : > { %p358_p3 = por %p357_p1, %p356_p0 }
  0xe7   : > { %p354_p9 = pneg %p353_p8 }
  0xe8   : > { %p360_p12 = por %p359_p6, %p358_p3 }
  0xea   : > { %p361_p13 = pnand %p360_p12, %p354_p9 }
  0xec   : > { %364 = shalt.err (!%p361_p13)
}
  0xed   : > { %261 = dma.vmem_to_hbm [thread:$0]  (%p588_p11), %s536_s26, 512, %s534_s29, %s159_s10  }
  0xee PF: > { %s185_s21 = sand.u32 1, %s391_s6   ;;  %p589_p7 = scmp.ne.s32.totalorder %s584_s19, 0 }
  0xef   : > { %p590_p10 = scmp.ge.s32.totalorder %s403_s9, 2  ;;  %s186_s22 = scalar_lea.sflag [#allocation4], %s185_s21 }
  0xf1   : > { %p268_p2 = pnand %p590_p10, %p589_p7 }
  0xf3   : > { %386 = dma.done.wait (!%p268_p2), %s186_s22, 512  }
  0xf4   : > { %388 = vsyncadd (!%p268_p2), %s186_s22, 4294966784  ;;  %p14_p4 = scmp.ge.s32.totalorder %s442_s12, 4   ;;  %s591_s6 = smov %s395_s7 }
  0xf5   : > { %s592_s7 = smov %s399_s8  ;;  %s593_s8 = smov %s454_s15 }
  0xf6   : > { %s594_s9 = smov %s442_s12  ;;  %16 = sbr.rel (!%p14_p4) target bundleno = 5 (0x5), region = 69 }
  0xfd   :  { %191 = vsyncpa [#allocation3], 1 }
  0xfe   :  { %193 = vsyncpa [#allocation3 + $0x1], 1 }
  0xff   :  { %194 = vsyncpa [#allocation4], 1 }
 0x100   :  { %196 = vsyncpa [#allocation4 + $0x1], 1 }

</bundles_post_ra>
